<compile_context>
chip_gen: v7x
topology: tpu7x:2x2x1
jax: 0.10.0
libtpu: 0.0.40
codegen_flags: <defaults>
</compile_context>

<pallas_src>
import math

import jax
import jax.numpy as jnp
from jax.experimental import pallas as pl
from jax.experimental.pallas import tpu as pltpu


def _glu_kernel(a_ref, b_ref, o_ref):
    # a_ref / b_ref / o_ref are (t_half, t_post) tiles.
    a = a_ref[...].astype(jnp.float32)
    b = b_ref[...].astype(jnp.float32)
    o_ref[...] = (a * jax.nn.sigmoid(b)).astype(o_ref.dtype)


def _choose_tiles(half, post, dtype_bytes, target_bytes=1024 * 1024):
    """Pick (t_half, t_post) so each block is ~target_bytes and layout-legal.

    Legality: each tile dim is either the full array dim, or a multiple of
    8 (sublane) / 128 (lane), so the (8, 128) BlockSpec constraint holds.
    """
    target_elems = max(1, target_bytes // dtype_bytes)
    if half * post <= target_elems:
        return half, post                      # whole half-slab fits one block
    # Tile the lane axis to a multiple of 128 (or keep full if already small).
    if post <= 128:
        t_post = post
    else:
        t_post = min(post, max(128, (target_elems // max(half, 1)) // 128 * 128))
    if half * t_post <= target_elems:
        return half, t_post
    # Still too big: also tile the sublane axis to a multiple of 8.
    t_half = min(half, max(8, (target_elems // t_post) // 8 * 8))
    return t_half, t_post


def glu(x, dim=1):
    """GLU: chunk x into two halves along `dim`, return first * sigmoid(second)."""
    shape = x.shape
    dim = dim % x.ndim
    c = shape[dim]
    assert c % 2 == 0, "GLU split axis must have even size"
    half = c // 2
    pre = math.prod(shape[:dim])
    post = math.prod(shape[dim + 1:])

    dtype_bytes = jnp.dtype(x.dtype).itemsize
    t_half, t_post = _choose_tiles(half, post, dtype_bytes)

    # Contiguous (free) reshape: chunk k along `dim` is exactly x4[:, k].
    x4 = x.reshape(pre, 2, half, post)

    grid = (pre, pl.cdiv(half, t_half), pl.cdiv(post, t_post))

    out_elems = pre * half * post
    cost = pl.CostEstimate(
        flops=2 * out_elems,                          # mul + sigmoid add
        transcendentals=out_elems,                    # one exp per output elem
        bytes_accessed=3 * out_elems * dtype_bytes,   # read both halves + write
    )

    out = pl.pallas_call(
        _glu_kernel,
        out_shape=jax.ShapeDtypeStruct((pre, half, post), x.dtype),
        grid_spec=pltpu.PrefetchScalarGridSpec(
            num_scalar_prefetch=0,
            grid=grid,
            in_specs=[
                pl.BlockSpec((None, None, t_half, t_post),
                             lambda p, h, q: (p, 0, h, q)),
                pl.BlockSpec((None, None, t_half, t_post),
                             lambda p, h, q: (p, 1, h, q)),
            ],
            out_specs=pl.BlockSpec((None, t_half, t_post),
                                   lambda p, h, q: (p, h, q)),
        ),
        compiler_params=pltpu.CompilerParams(
            dimension_semantics=("parallel", "parallel", "parallel")),
        cost_estimate=cost,
    )(x4, x4)

    return out.reshape(*shape[:dim], half, *shape[dim + 1:])


if __name__ == "__main__":
    key = jax.random.PRNGKey(0)
    x = jax.random.normal(key, (2, 4, 16, 16), dtype=jnp.float32)

    y = glu(x, dim=1)
    jax.block_until_ready(y)

    # reference check in plain JAX
    first, second = jnp.split(x, 2, axis=1)
    y_ref = first * jax.nn.sigmoid(second)
    assert y.shape == (2, 2, 16, 16)
    assert jnp.allclose(y, y_ref, atol=1e-6, rtol=1e-6)

    print("KERNEL_OK")
</pallas_src>

<mosaic_0001>
module attributes {stable_mosaic.version = 11 : i64} {
  func.func @_glu_kernel(%arg0: i32, %arg1: i32, %arg2: i32, %arg3: memref<1x1x2x256xf32, #tpu.memory_space<vmem>>, %arg4: memref<1x1x2x256xf32, #tpu.memory_space<vmem>>, %arg5: memref<1x2x256xf32, #tpu.memory_space<vmem>>) attributes {dimension_semantics = [#tpu.dimension_semantics<parallel>, #tpu.dimension_semantics<parallel>, #tpu.dimension_semantics<parallel>], iteration_bounds = array<i64: 2, 1, 1>, scalar_prefetch = 0 : i64, scratch_operands = 0 : i64, tpu.core_type = #tpu.core_type<tc>, window_params = [{transform_indices = @transform_0, window_bounds = array<i64: 1, 1, 2, 256>}, {transform_indices = @transform_1, window_bounds = array<i64: 1, 1, 2, 256>}, {transform_indices = @transform_2, window_bounds = array<i64: 1, 2, 256>}]} {
    %c0 = arith.constant 0 : index
    %c0_0 = arith.constant 0 : index
    %c0_1 = arith.constant 0 : index
    %c0_2 = arith.constant 0 : index
    %0 = vector.load %arg3[%c0, %c0_0, %c0_1, %c0_2] : memref<1x1x2x256xf32, #tpu.memory_space<vmem>>, vector<1x1x2x256xf32>
    %1 = vector.shape_cast %0 : vector<1x1x2x256xf32> to vector<2x256xf32>
    %c0_3 = arith.constant 0 : index
    %c0_4 = arith.constant 0 : index
    %c0_5 = arith.constant 0 : index
    %c0_6 = arith.constant 0 : index
    %2 = vector.load %arg4[%c0_3, %c0_4, %c0_5, %c0_6] : memref<1x1x2x256xf32, #tpu.memory_space<vmem>>, vector<1x1x2x256xf32>
    %3 = vector.shape_cast %2 : vector<1x1x2x256xf32> to vector<2x256xf32>
    %4 = arith.negf %3 : vector<2x256xf32>
    %5 = math.exp %4 : vector<2x256xf32>
    %cst = arith.constant 1.000000e+00 : f32
    %6 = vector.broadcast %cst : f32 to vector<2x256xf32>
    %7 = arith.addf %6, %5 : vector<2x256xf32>
    %8 = arith.divf %6, %7 : vector<2x256xf32>
    %9 = arith.mulf %1, %8 : vector<2x256xf32>
    %c0_7 = arith.constant 0 : index
    %c0_8 = arith.constant 0 : index
    %c0_9 = arith.constant 0 : index
    %10 = vector.load %arg5[%c0_7, %c0_8, %c0_9] : memref<1x2x256xf32, #tpu.memory_space<vmem>>, vector<1x2x256xf32>
    %11 = vector.shape_cast %10 : vector<1x2x256xf32> to vector<2x256xf32>
    %12 = vector.shape_cast %9 : vector<2x256xf32> to vector<1x2x256xf32>
    tpu.vector_store %arg5[%c0_7, %c0_8, %c0_9], %12 {strides = array<i32>} : memref<1x2x256xf32, #tpu.memory_space<vmem>>, vector<1x2x256xf32>,
    return
  }
  func.func @transform_0(%arg0: i32, %arg1: i32, %arg2: i32) -> (i32, i32, i32, i32) {
    %c0_i32 = arith.constant 0 : i32
    %c0_i32_0 = arith.constant 0 : i32
    return %arg0, %c0_i32, %arg1, %arg2 : i32, i32, i32, i32
  }
  func.func @transform_1(%arg0: i32, %arg1: i32, %arg2: i32) -> (i32, i32, i32, i32) {
    %c1_i32 = arith.constant 1 : i32
    %c0_i32 = arith.constant 0 : i32
    return %arg0, %c1_i32, %arg1, %arg2 : i32, i32, i32, i32
  }
  func.func @transform_2(%arg0: i32, %arg1: i32, %arg2: i32) -> (i32, i32, i32) {
    %c0_i32 = arith.constant 0 : i32
    return %arg0, %arg1, %arg2 : i32, i32, i32
  }
}

</mosaic_0001>

<bundles_post_ra>
// kernel: tpu_custom_call.1
= control target key start
LH: loop header
LB: loop body
LE: loop exit
PB: predicated region body
PF: predicated region fallthrough
CT: control target
= control target key end

     0   :  { %7 = vsyncpa [#allocation3], 0  ;;  %s870_s0 = inlined_call_operand.hbm [shape: f32[2,2,2,256], index: 0, kind: input, shape index: {}]   ;;  %s871_s1 = inlined_call_operand.hbm [shape: f32[2,2,2,256], index: 1, kind: input, shape index: {}]   ;;  %s872_s2 = inlined_call_operand.hbm [shape: f32[2,2,256], index: 2, kind: output, shape index: {}]  }
   0x1   :  { %9 = vsyncpa [#allocation3 + $0x1], 0 }
   0x2   :  { %10 = vsyncpa [#allocation6], 0 }
   0x3   :  { %12 = vsyncpa [#allocation6 + $0x1], 0 }
   0x4   :  { %13 = vsyncpa [#allocation4], 0 }
   0x5   :  { %15 = vsyncpa [#allocation4 + $0x1], 0  ;;  %s651_s9 = smov 0   ;;  %s653_s10 = smov 0  }
   0x6   :  { %s655_s11 = smov 0   ;;  %s657_s12 = smov 0  }
   0x7   :  { %s659_s13 = smov 0   ;;  %s661_s14 = smov 0  }
   0x8 LB: > { %s390_s15 = sadd.s32 4294967295, %s631_s14   ;;  %s391_s16 = sadd.s32 4294967294, %s631_s14   ;;  %s631_s14 = sphi %s661_s14, %s21_s14   ;;  %s627_s13 = sphi %s659_s13, %s892_s13   ;;  %s623_s12 = sphi %s657_s12, %s891_s12   ;;  %s619_s11 = sphi %s655_s11, %s890_s11   ;;  %s615_s10 = sphi %s653_s10, %s889_s10   ;;  %s611_s9 = sphi %s651_s9, %s888_s9  }
   0x9   : > { %s40_s17 = sadd.s32 1, %s627_s13  ;;  %s51_s18 = sadd.s32 1, %s619_s11 }
   0xa   : > { %p42_p0 = scmp.ge.s32.totalorder %s40_s17, 2  ;;  %p58_p1 = scmp.ne.s32.totalorder %s619_s11, %s615_s10 }
   0xb   : > { %p59_p2 = scmp.eq.s32.totalorder %s631_s14, 0  ;;  %p64_p3 = scmp.ne.s32.totalorder %s615_s10, %s611_s9 }
   0xc   : > { %s894_s17 = smov (%p42_p0, %s40_s17), 0  ;;  %p65_p5 = scmp.eq.s32.totalorder %s390_s15, 0 }
   0xd   : > { %p692_p4 = por %p59_p2, %p58_p1  ;;  %s44_s20 = ssub.s32 %s627_s13, %s894_s17 }
   0xe   : > { %p122_p6 = scmp.eq.s32.totalorder %s390_s15, 1  ;;  %p49_p7 = scmp.eq.s32.totalorder %s44_s20, 0 }
   0xf   : > { %p698_p8 = por %p65_p5, %p64_p3  ;;  %p128_p10 = scmp.eq.s32.totalorder %s391_s16, 1 }
  0x10   : > { %p702_p9 = por %p122_p6, %p58_p1  ;;  %p430_p13 = scmp.lt.s32.totalorder %s631_s14, 2 }
  0x11   : > { %s876_s21 = scalar_select %p698_p8, 1, 0 }
  0x12   : > { %s877_s22 = scalar_select %p702_p9, 1, 0 }
  0x13   : > { %s707_s23 = scalar_select %p49_p7, %s619_s11, %s51_s18  }
  0x14   : > { %p709_p11 = por %p128_p10, %p64_p3  ;;  %s716_s25 = sand.u32 1, %s619_s11  }
  0x15   : > { %s394_s26 = sshll.u32 %s716_s25, 2  ;;  %s410_s27 = sshll.u32 %s627_s13, 7 }
  0x16   : > { %s878_s24 = scalar_select %p709_p11, 1, 0 }
  0x17   : > { %s725_s30 = scalar_lea.hbm %s870_s0, %s410_s27  ;;  %s152_s3 = scalar_lea.vmem [#allocation2], %s394_s26 }
  0x18   : > { %s164_s4 = sshll.u32 %s152_s3, 4  ;;  %p733_p0 = pnand %p430_p13, %p692_p4  ;;  %s729_s4 = int_to_ptr.vmem [resolvable:$true] %s164_s4 }
  0x19   : > { %s149_s6 = scalar_lea.sflag [#allocation3], %s716_s25  ;;  %s484_s7 = scalar_lea.hbm %s725_s30, 64 }
  0x1a   : > { %p485_p3 = scmp.ne.s32.totalorder %s725_s30, %s484_s7  ;;  %p486_p5 = pneg %p733_p0 }
  0x1b   : > { %s489_s16 = scalar_lea.hbm %s870_s0, 256  ;;  %p490_p4 = scmp.lt.u32.totalorder %s725_s30, %s870_s0 }
  0x1c   : > { %p487_p6 = pnand %p486_p5, %p485_p3  ;;  %p491_p10 = scmp.lt.u32.totalorder %s489_s16, %s484_s7 }
  0x1d   : > { %p493_p12 = scmp.lt.u32.totalorder %s484_s7, %s725_s30 }
  0x1e   : > { %p488_p7 = pneg %p487_p6  ;;  %p492_p13 = por %p491_p10, %p490_p4 }
  0x20   : > { %p494_p1 = por %p493_p12, %p492_p13 }
  0x22   : > { %p495_p2 = pnand %p494_p1, %p488_p7 }
  0x24   : > { %498 = shalt.err (!%p495_p2)
}
  0x25   : > { %s499_s20 = scalar_lea.vmem %s729_s4, 64  ;;  %s633_s28 = smov [#allocation2]  }
  0x26   : > { %p500_p3 = scmp.ne.s32.totalorder %s729_s4, %s499_s20  ;;  %s504_s29 = sshll.u32 %s633_s28, 4  ;;  %s505_s29 = int_to_ptr.vmem [resolvable:$false] %s504_s29 }
  0x27   : > { %s506_s3 = scalar_lea.vmem %s505_s29, 128  ;;  %p507_p9 = scmp.lt.s32.totalorder %s729_s4, %s505_s29 }
  0x28   : > { %p502_p6 = pnand %p500_p3, %p486_p5  ;;  %p508_p4 = scmp.lt.s32.totalorder %s506_s3, %s499_s20 }
  0x2a   : > { %p503_p11 = pneg %p502_p6  ;;  %p509_p10 = por %p508_p4, %p507_p9 }
  0x2c   : > { %p510_p12 = pnand %p509_p10, %p503_p11 }
  0x2e   : > { %513 = shalt.err (!%p510_p12)
}
  0x2f   : > { %422 = dma.hbm_to_vmem [thread:$0]  (!%p733_p0), %s725_s30, 64, %s729_s4, %s149_s6  }
  0x30   : > { %p880_p1 = scmp.lt.s32.totalorder %s631_s14, 3  ;;  %p881_p2 = scmp.ge.s32.totalorder %s631_s14, 1 }
  0x31   : > { %s316_s16 = scalar_lea.hbm %s871_s1, %s410_s27  ;;  %s175_s18 = scalar_lea.vmem [#allocation5], %s394_s26 }
  0x32   : > { %p769_p7 = pnand %p881_p2, %p880_p1  ;;  %s188_s19 = sshll.u32 %s175_s18, 4  ;;  %s189_s19 = int_to_ptr.vmem [resolvable:$true] %s188_s19 }
  0x33   : > { %s780_s20 = scalar_lea.hbm %s316_s16, 64  ;;  %s172_s30 = scalar_lea.sflag [#allocation6], %s716_s25 }
  0x34   : > { %s882_s7 = scalar_select %p769_p7, 1, 0 }
  0x35   : > { %s544_s4 = scalar_lea.hbm %s316_s16, 128  ;;  %s519_s27 = scalar_lea.hbm %s871_s1, 256 }
  0x36   : > { %p515_p9 = scmp.ne.s32.totalorder %s780_s20, %s544_s4  ;;  %p520_p3 = scmp.lt.u32.totalorder %s780_s20, %s871_s1 }
  0x37   : > { %p521_p6 = scmp.lt.u32.totalorder %s519_s27, %s544_s4  ;;  %p523_p10 = scmp.lt.u32.totalorder %s544_s4, %s780_s20 }
  0x38   : > { %p517_p11 = pnand %p515_p9, %p486_p5 }
  0x39   : > { %p522_p4 = por %p521_p6, %p520_p3 }
  0x3a   : > { %p518_p13 = pneg %p517_p11 }
  0x3b   : > { %p524_p12 = por %p523_p10, %p522_p4 }
  0x3d   : > { %p525_p1 = pnand %p524_p12, %p518_p13 }
  0x3f   : > { %528 = shalt.err (!%p525_p1)
}
  0x40   : > { %s529_s25 = scalar_lea.vmem %s189_s19, 64  ;;  %s634_s3 = smov [#allocation5]  }
  0x41   : > { %p530_p2 = scmp.ne.s32.totalorder %s189_s19, %s529_s25  ;;  %s534_s8 = sshll.u32 %s634_s3, 4  ;;  %s535_s8 = int_to_ptr.vmem [resolvable:$false] %s534_s8 }
  0x42   : > { %s536_s15 = scalar_lea.vmem %s535_s8, 128  ;;  %p537_p8 = scmp.lt.s32.totalorder %s189_s19, %s535_s8 }
  0x43   : > { %p532_p9 = pnand %p530_p2, %p486_p5  ;;  %p538_p7 = scmp.lt.s32.totalorder %s536_s15, %s529_s25 }
  0x45   : > { %p533_p11 = pneg %p532_p9  ;;  %p539_p3 = por %p538_p7, %p537_p8 }
  0x47   : > { %p540_p6 = pnand %p539_p3, %p533_p11 }
  0x49   : > { %543 = shalt.err (!%p540_p6)
}
  0x4a   : > { %425 = dma.hbm_to_vmem [thread:$0]  (!%p733_p0), %s780_s20, 64, %s189_s19, %s172_s30  }
  0x4b   : > { %p883_p13 = scmp.ne.s32.totalorder %s882_s7, 0 }
  0x4c   : > { %s804_s16 = sand.u32 (!%p883_p13), 1, %s615_s10   ;;  %p884_p5 = scmp.ne.s32.totalorder (!%p883_p13), %s876_s21, 0 }
  0x4d   : > { %197 = sbr.rel (%p883_p13) target bundleno = 130 (0x82), region = 28  ;;  %s401_s18 = sshll.u32 (!%p883_p13), %s804_s16, 2 }
  0x4e   : > { %s200_s4 = scalar_lea.sflag (!%p883_p13), [#allocation3], %s804_s16  ;;  %s203_s6 = scalar_lea.vmem (!%p883_p13), [#allocation2], %s401_s18 }
  0x54   : > { %598 = dma.done.wait (%p884_p5), %s200_s4, 64  }
  0x55   : > { %600 = vsyncadd (%p884_p5), %s200_s4, 4294967232  ;;  %s209_s5 = scalar_lea.sflag [#allocation6], %s804_s16  ;;  %s212_s19 = scalar_lea.vmem [#allocation5], %s401_s18 }
  0x56   : > { %602 = dma.done.wait (%p884_p5), %s209_s5, 64  }
  0x57   : > { %604 = vsyncadd (%p884_p5), %s209_s5, 4294967232  ;;  %v242_v0 = vld [vmem:[%s212_s19] sm:$0xf]  ;;  %v241_v4 = vld [vmem:[%s203_s6] sm:$0xf]  ;;  %s237_s7 = scalar_lea.vmem [#allocation7], %s401_s18 }
  0x58   : > { %v404_v1 = vmul.f32 -1.442695, %v242_v0  ;;  %s270_s20 = sshll.u32 %s237_s7, 4  ;;  %s412_s30 = sshll.u32 %s623_s12, 6  ;;  %s818_s20 = int_to_ptr.vmem [resolvable:$true] %s270_s20 }
  0x59   : > { %s823_s27 = scalar_lea.hbm %s872_s2, %s412_s30  ;;  %s252_s29 = scalar_lea.sflag [#allocation4], %s804_s16 }
  0x5a   : > { %480 = vpow2.f32 %v404_v1  ;;  %s545_s26 = scalar_lea.vmem %s818_s20, 64  ;;  %p885_p0 = scmp.ne.s32.totalorder %s877_s22, 0 }
  0x5b   : > { %p546_p8 = scmp.ne.s32.totalorder %s818_s20, %s545_s26  ;;  %s635_s12 = smov [#allocation7]  }
  0x5c   : > { %s549_s25 = sshll.u32 %s635_s12, 4  ;;  %s550_s25 = int_to_ptr.vmem [resolvable:$false] %s549_s25 }
  0x5d   : > { %p547_p7 = pnand %p546_p8, %p885_p0  ;;  %s551_s3 = scalar_lea.vmem %s550_s25, 128 }
  0x5e   : > { %p552_p10 = scmp.lt.s32.totalorder %s818_s20, %s550_s25  ;;  %p553_p12 = scmp.lt.s32.totalorder %s551_s3, %s545_s26 }
  0x5f   : > { %p548_p4 = pneg %p547_p7 }
  0x60   : > { %p554_p1 = por %p553_p12, %p552_p10 }
  0x62   : > { %p555_p2 = pnand %p554_p1, %p548_p4 }
  0x64   : > { %v481_v2 = vpop.eup %480 }
  0x65   : > { %v246_v3 = vadd.f32 1.0, %v481_v2 }
  0x67   : > { %482 = vrcp.f32 %v246_v3 }
  0x71   : > { %v483_v5 = vpop.eup %482 }
  0x72   : > { %v249_v6 = vmul.f32 %v483_v5, %v241_v4 }
  0x74   : > { %250 = vst [vmem:[%s237_s7] sm:$0xf] %v249_v6 }
  0x75   : > { %558 = shalt.err (!%p555_p2)
}
  0x76   : > { %s559_s8 = scalar_lea.hbm %s823_s27, 64  ;;  %s563_s18 = scalar_lea.hbm %s872_s2, 128 }
  0x77   : > { %p560_p9 = scmp.ne.s32.totalorder %s823_s27, %s559_s8  ;;  %p564_p6 = scmp.lt.u32.totalorder %s823_s27, %s872_s2 }
  0x78   : > { %p565_p13 = scmp.lt.u32.totalorder %s563_s18, %s559_s8  ;;  %p567_p8 = scmp.lt.u32.totalorder %s559_s8, %s823_s27 }
  0x79   : > { %p561_p11 = pnand %p560_p9, %p885_p0 }
  0x7a   : > { %p566_p5 = por %p565_p13, %p564_p6 }
  0x7b   : > { %p562_p3 = pneg %p561_p11 }
  0x7c   : > { %p568_p7 = por %p567_p8, %p566_p5 }
  0x7e   : > { %p569_p4 = pnand %p568_p7, %p562_p3 }
  0x80   : > { %572 = shalt.err (!%p569_p4)
}
  0x81   : > { %417 = dma.vmem_to_hbm [thread:$0]  (%p885_p0), %s818_s20, 64, %s823_s27, %s252_s29  }
  0x82 PF: > { %s282_s5 = sand.u32 1, %s611_s9   ;;  %p886_p10 = scmp.ne.s32.totalorder %s878_s24, 0 }
  0x83   : > { %p887_p12 = scmp.ge.s32.totalorder %s631_s14, 2  ;;  %s283_s19 = scalar_lea.sflag [#allocation4], %s282_s5 }
  0x85   : > { %p427_p1 = pnand %p887_p12, %p886_p10 }
  0x87   : > { %606 = dma.done.wait (!%p427_p1), %s283_s19, 64  }
  0x88   : > { %608 = vsyncadd (!%p427_p1), %s283_s19, 4294967232  ;;  %s21_s14 = sadd.s32 1, %s631_s14   ;;  %s888_s9 = smov %s615_s10 }
  0x89   : > { %p18_p2 = scmp.ge.s32.totalorder %s21_s14, 4   ;;  %s889_s10 = smov %s619_s11 }
  0x8a   : > { %s890_s11 = smov %s707_s23  ;;  %s891_s12 = smov %s627_s13 }
  0x8b   : > { %s892_s13 = smov %s894_s17  ;;  %20 = sbr.rel (!%p18_p2) target bundleno = 8 (0x8), region = 86 }
  0x92   :  { %288 = vsyncpa [#allocation3], 1 }
  0x93   :  { %290 = vsyncpa [#allocation3 + $0x1], 1 }
  0x94   :  { %291 = vsyncpa [#allocation6], 1 }
  0x95   :  { %293 = vsyncpa [#allocation6 + $0x1], 1 }
  0x96   :  { %294 = vsyncpa [#allocation4], 1 }
  0x97   :  { %296 = vsyncpa [#allocation4 + $0x1], 1 }

</bundles_post_ra>
